<compile_context>
chip_gen: v6e
topology: v6e:2x2x1
jax: 0.10.0
libtpu: 0.0.40
codegen_flags: <defaults>
</compile_context>

<pallas_src>
import jax
import jax.numpy as jnp
from jax.experimental import pallas as pl
from jax.experimental.pallas import tpu as pltpu


BN_EPS = 1e-5
_LANE = 128


def _round_up(n, m):
    return ((n + m - 1) // m) * m


def _pick_batch_tile(batch, max_tile=512):
    """Pick a batch tile that divides `batch`; keep grid length >= 2 if possible."""
    if batch <= 8:
        return batch
    for t in (max_tile, 256, 128, 64, 32, 16, 8):
        if t < batch and batch % t == 0:
            return t
    return batch


# --------------------- kernel 1: Linear + per-tile batch stats ----------------

def _fc_stats_kernel(x_ref, w_ref, b_ref, h_ref, stats_ref):
    """h = x @ W + b (MXU); also emit per-tile sum and sum-of-squares of h."""
    h = jnp.dot(x_ref[...], w_ref[...], preferred_element_type=jnp.float32)
    h = h + b_ref[...]
    h_ref[...] = h
    s = jnp.sum(h, axis=0, keepdims=True)        # (1, o_pad)
    sq = jnp.sum(h * h, axis=0, keepdims=True)   # (1, o_pad)
    stats_ref[...] = jnp.concatenate([s, sq], axis=0)[None, :, :]  # (1, 2, o_pad)


# --------------------- kernel 2: BN affine + ReLU + concat --------------------

def _bn_relu_concat_kernel(h_ref, x_ref, scale_ref, shift_ref, y_ref):
    out = jnp.maximum(h_ref[...] * scale_ref[...] + shift_ref[...], 0.0)
    y_ref[...] = jnp.concatenate([out, x_ref[...]], axis=-1)


def residual_forward(x, w, b, gamma, beta, *, eps=BN_EPS, batch_tile=None):
    """CTGAN Residual forward.

    x     : (batch, i)  input
    w     : (i, o)      Linear weight, transposed vs torch's (o, i) layout
    b     : (o,)        Linear bias
    gamma : (o,)        BatchNorm1d.weight
    beta  : (o,)        BatchNorm1d.bias
    returns (batch, o + i) = concat([relu(batchnorm(x @ w + b)), x], axis=1)
    """
    f32 = jnp.float32
    batch, in_dim = x.shape
    out_dim = w.shape[1]

    i_pad = max(_LANE, _round_up(in_dim, _LANE))
    o_pad = max(_LANE, _round_up(out_dim, _LANE))

    # Lane-dense padding (zero columns contribute nothing to matmul / stats).
    xp = jnp.pad(x.astype(f32), ((0, 0), (0, i_pad - in_dim)))
    wp = jnp.pad(w.astype(f32), ((0, i_pad - in_dim), (0, o_pad - out_dim)))
    bp = jnp.pad(b.astype(f32).reshape(1, out_dim), ((0, 0), (0, o_pad - out_dim)))
    gp = jnp.pad(gamma.astype(f32).reshape(1, out_dim), ((0, 0), (0, o_pad - out_dim)))
    bep = jnp.pad(beta.astype(f32).reshape(1, out_dim), ((0, 0), (0, o_pad - out_dim)))

    if batch_tile is None:
        batch_tile = _pick_batch_tile(batch)
    assert batch % batch_tile == 0, "batch must be divisible by batch_tile"
    num_tiles = batch // batch_tile

    # ---- pass 1: fc + partial batch statistics -------------------------------
    h, partial_stats = pl.pallas_call(
        _fc_stats_kernel,
        out_shape=(
            jax.ShapeDtypeStruct((batch, o_pad), f32),
            jax.ShapeDtypeStruct((num_tiles, 2, o_pad), f32),
        ),
        grid_spec=pltpu.PrefetchScalarGridSpec(
            num_scalar_prefetch=0,
            grid=(num_tiles,),
            in_specs=[
                pl.BlockSpec((batch_tile, i_pad), lambda i: (i, 0)),  # x tile
                pl.BlockSpec((i_pad, o_pad), lambda i: (0, 0)),       # W resident
                pl.BlockSpec((1, o_pad), lambda i: (0, 0)),           # b resident
            ],
            out_specs=[
                pl.BlockSpec((batch_tile, o_pad), lambda i: (i, 0)),  # h tile
                pl.BlockSpec((1, 2, o_pad), lambda i: (i, 0, 0)),     # per-tile stats
            ],
        ),
        compiler_params=pltpu.CompilerParams(
            dimension_semantics=("parallel",),
        ),
    )(xp, wp, bp)

    # ---- tiny epilogue: fold BatchNorm into per-feature scale / shift --------
    totals = jnp.sum(partial_stats, axis=0)          # (2, o_pad)
    mean = totals[0] / batch
    var = totals[1] / batch - mean * mean            # biased variance (training BN)
    inv = jax.lax.rsqrt(var + eps)
    scale = (gp[0] * inv).reshape(1, o_pad)
    shift = (bep[0] - mean * gp[0] * inv).reshape(1, o_pad)

    # ---- pass 2: normalize + relu + concat with the input --------------------
    y = pl.pallas_call(
        _bn_relu_concat_kernel,
        out_shape=jax.ShapeDtypeStruct((batch, o_pad + i_pad), f32),
        grid_spec=pltpu.PrefetchScalarGridSpec(
            num_scalar_prefetch=0,
            grid=(num_tiles,),
            in_specs=[
                pl.BlockSpec((batch_tile, o_pad), lambda i: (i, 0)),  # h tile
                pl.BlockSpec((batch_tile, i_pad), lambda i: (i, 0)),  # x tile
                pl.BlockSpec((1, o_pad), lambda i: (0, 0)),           # scale
                pl.BlockSpec((1, o_pad), lambda i: (0, 0)),           # shift
            ],
            out_specs=pl.BlockSpec((batch_tile, o_pad + i_pad), lambda i: (i, 0)),
        ),
        compiler_params=pltpu.CompilerParams(
            dimension_semantics=("parallel",),
        ),
    )(h, xp, scale, shift)

    if in_dim == i_pad and out_dim == o_pad:
        return y  # already exactly concat([relu(bn(h)), x]) with no padding
    # Strip the zero-padded feature columns from each half.
    return jnp.concatenate([y[:, :out_dim], y[:, o_pad:o_pad + in_dim]], axis=1)


# ------------------------------ reference & test ------------------------------

def residual_reference(x, w, b, gamma, beta, eps=BN_EPS):
    """Plain-JAX reference (training-mode BatchNorm1d, biased variance)."""
    h = x @ w + b
    mean = jnp.mean(h, axis=0)
    var = jnp.mean((h - mean) ** 2, axis=0)
    out = (h - mean) * jax.lax.rsqrt(var + eps) * gamma + beta
    out = jnp.maximum(out, 0.0)
    return jnp.concatenate([out, x], axis=1)


def _run_case(key, batch, in_dim, out_dim, random_affine):
    kx, kw, kb, kg, kbe = jax.random.split(key, 5)
    bound = 1.0 / (in_dim ** 0.5)
    x = jax.random.normal(kx, (batch, in_dim), dtype=jnp.float32)
    w = jax.random.uniform(kw, (in_dim, out_dim), dtype=jnp.float32,
                           minval=-bound, maxval=bound)
    b = jax.random.uniform(kb, (out_dim,), dtype=jnp.float32,
                           minval=-bound, maxval=bound)
    if random_affine:
        gamma = 1.0 + 0.1 * jax.random.normal(kg, (out_dim,), dtype=jnp.float32)
        beta = 0.1 * jax.random.normal(kbe, (out_dim,), dtype=jnp.float32)
    else:  # fresh nn.BatchNorm1d defaults
        gamma = jnp.ones((out_dim,), jnp.float32)
        beta = jnp.zeros((out_dim,), jnp.float32)

    y = jax.block_until_ready(residual_forward(x, w, b, gamma, beta))
    y_ref = residual_reference(x, w, b, gamma, beta)
    assert y.shape == (batch, out_dim + in_dim), y.shape
    err = float(jnp.max(jnp.abs(y - y_ref)))
    assert jnp.allclose(y, y_ref, atol=1e-4, rtol=1e-4), f"max abs err = {err}"


if __name__ == "__main__":
    key = jax.random.PRNGKey(0)
    k1, k2 = jax.random.split(key)

    # Case 1: small, non-lane-aligned feature dims (exercises padding path),
    # batch 256 -> batch_tile 128, grid of 2 (pipelined, megacore-friendly).
    _run_case(k1, batch=256, in_dim=32, out_dim=64, random_affine=False)

    # Case 2: lane-aligned dims (fast path, no post-slice), nontrivial affine.
    _run_case(k2, batch=64, in_dim=128, out_dim=128, random_affine=True)

    # TODO(synk): BatchNorm1d running_mean/running_var buffer updates (training
    # side effect) are intentionally not produced.
    print("KERNEL_OK")
</pallas_src>

<mosaic_0001>
module attributes {stable_mosaic.version = 11 : i64} {
  func.func @_fc_stats_kernel(%arg0: i32, %arg1: memref<128x128xf32, #tpu.memory_space<vmem>>, %arg2: memref<128x128xf32, #tpu.memory_space<vmem>>, %arg3: memref<1x128xf32, #tpu.memory_space<vmem>>, %arg4: memref<128x128xf32, #tpu.memory_space<vmem>>, %arg5: memref<1x2x128xf32, #tpu.memory_space<vmem>>) attributes {dimension_semantics = [#tpu.dimension_semantics<parallel>], iteration_bounds = array<i64: 2>, scalar_prefetch = 0 : i64, scratch_operands = 0 : i64, tpu.core_type = #tpu.core_type<tc>, window_params = [{transform_indices = @transform_0, window_bounds = array<i64: 128, 128>}, {pipeline_mode = #tpu.pipeline_mode<synchronous>, transform_indices = @transform_1, window_bounds = array<i64: 128, 128>}, {pipeline_mode = #tpu.pipeline_mode<synchronous>, transform_indices = @transform_2, window_bounds = array<i64: 1, 128>}, {transform_indices = @transform_3, window_bounds = array<i64: 128, 128>}, {transform_indices = @transform_4, window_bounds = array<i64: 1, 2, 128>}]} {
    %c0 = arith.constant 0 : index
    %c0_0 = arith.constant 0 : index
    %0 = vector.load %arg1[%c0, %c0_0] : memref<128x128xf32, #tpu.memory_space<vmem>>, vector<128x128xf32>
    %c0_1 = arith.constant 0 : index
    %c0_2 = arith.constant 0 : index
    %1 = vector.load %arg2[%c0_1, %c0_2] : memref<128x128xf32, #tpu.memory_space<vmem>>, vector<128x128xf32>
    %cst = arith.constant dense<0.000000e+00> : vector<128x128xf32>
    %2 = tpu.matmul %0, %1, %cst {dimension_numbers = #tpu.dot_dimension_numbers<[1], [0], [0], [1], [0, 0, 1, 1], [], []>} : vector<128x128xf32>, vector<128x128xf32>, vector<128x128xf32> -> vector<128x128xf32>
    %c0_3 = arith.constant 0 : index
    %c0_4 = arith.constant 0 : index
    %3 = vector.load %arg3[%c0_3, %c0_4] : memref<1x128xf32, #tpu.memory_space<vmem>>, vector<1x128xf32>
    %4 = vector.broadcast %3 : vector<1x128xf32> to vector<128x128xf32>
    %5 = arith.addf %2, %4 : vector<128x128xf32>
    %c0_5 = arith.constant 0 : index
    %c0_6 = arith.constant 0 : index
    %6 = vector.load %arg4[%c0_5, %c0_6] : memref<128x128xf32, #tpu.memory_space<vmem>>, vector<128x128xf32>
    tpu.vector_store %arg4[%c0_5, %c0_6], %5 {strides = array<i32>} : memref<128x128xf32, #tpu.memory_space<vmem>>, vector<128x128xf32>,
    %cst_7 = arith.constant dense<0.000000e+00> : vector<128xf32>
    %7 = vector.multi_reduction <add>, %5, %cst_7 [0] : vector<128x128xf32> to vector<128xf32>
    %8 = vector.shape_cast %7 : vector<128xf32> to vector<1x128xf32>
    %9 = arith.mulf %5, %5 : vector<128x128xf32>
    %cst_8 = arith.constant dense<0.000000e+00> : vector<128xf32>
    %10 = vector.multi_reduction <add>, %9, %cst_8 [0] : vector<128x128xf32> to vector<128xf32>
    %11 = vector.shape_cast %10 : vector<128xf32> to vector<1x128xf32>
    %12 = tpu.concatenate %8, %11 in 0 : vector<1x128xf32>, vector<1x128xf32> -> vector<2x128xf32>
    %13 = vector.shape_cast %12 : vector<2x128xf32> to vector<1x2x128xf32>
    %c0_9 = arith.constant 0 : index
    %c0_10 = arith.constant 0 : index
    %c0_11 = arith.constant 0 : index
    %14 = vector.load %arg5[%c0_9, %c0_10, %c0_11] : memref<1x2x128xf32, #tpu.memory_space<vmem>>, vector<1x2x128xf32>
    tpu.vector_store %arg5[%c0_9, %c0_10, %c0_11], %13 {strides = array<i32>} : memref<1x2x128xf32, #tpu.memory_space<vmem>>, vector<1x2x128xf32>,
    return
  }
  func.func @transform_0(%arg0: i32) -> (i32, i32) {
    %c0_i32 = arith.constant 0 : i32
    %c0_i32_0 = arith.constant 0 : i32
    return %arg0, %c0_i32 : i32, i32
  }
  func.func @transform_1(%arg0: i32) -> (i32, i32) {
    %c0_i32 = arith.constant 0 : i32
    %c0_i32_0 = arith.constant 0 : i32
    %c0_i32_1 = arith.constant 0 : i32
    return %c0_i32, %c0_i32_0 : i32, i32
  }
  func.func @transform_2(%arg0: i32) -> (i32, i32) {
    %c0_i32 = arith.constant 0 : i32
    %c0_i32_0 = arith.constant 0 : i32
    %c0_i32_1 = arith.constant 0 : i32
    return %c0_i32, %c0_i32_0 : i32, i32
  }
  func.func @transform_3(%arg0: i32) -> (i32, i32) {
    %c0_i32 = arith.constant 0 : i32
    %c0_i32_0 = arith.constant 0 : i32
    return %arg0, %c0_i32 : i32, i32
  }
  func.func @transform_4(%arg0: i32) -> (i32, i32, i32) {
    %c0_i32 = arith.constant 0 : i32
    %c0_i32_0 = arith.constant 0 : i32
    %c0_i32_1 = arith.constant 0 : i32
    return %arg0, %c0_i32, %c0_i32_0 : i32, i32, i32
  }
}

</mosaic_0001>

<bundles_post_ra>
// kernel: tpu_custom_call.1
= control target key start
LH: loop header
LB: loop body
LE: loop exit
PB: predicated region body
PF: predicated region fallthrough
CT: control target
= control target key end

     0   :  { %10 = vsyncpa [#allocation3], 0  ;;  %s1352_s0 = inlined_call_operand.hbm [shape: f32[256,128], index: 0, kind: input, shape index: {}]   ;;  %s1353_s1 = inlined_call_operand.hbm [shape: f32[128,128], index: 1, kind: input, shape index: {}]   ;;  %s1354_s2 = inlined_call_operand.vmem [shape: f32[1,128], index: 2, kind: input, shape index: {}]   ;;  %s1355_s3 = inlined_call_operand.hbm [shape: f32[256,128], index: 3, kind: output, shape index: {0}]   ;;  %s1356_s4 = inlined_call_operand.hbm [shape: f32[2,2,128], index: 4, kind: output, shape index: {1}]  }
   0x1   :  { %12 = vsyncpa [#allocation3 + $0x1], 0 }
   0x2   :  { %13 = vsyncpa [#allocation6], 0 }
   0x3   :  { %14 = vsyncpa [#allocation4], 0 }
   0x4   :  { %16 = vsyncpa [#allocation4 + $0x1], 0 }
   0x5   :  { %17 = vsyncpa [#allocation9], 0 }
   0x6   :  { %19 = vsyncpa [#allocation9 + $0x1], 0  ;;  %s1047_s15 = smov 0   ;;  %s1049_s16 = smov 0  }
   0x7   :  { %s1051_s17 = smov 0   ;;  %s1053_s18 = smov 0  }
   0x8 LB: > { %s1068_s19 = sadd.s32 4294967295, %s1012_s18   ;;  %s652_s20 = sadd.s32 4294967294, %s1012_s18   ;;  %s1012_s18 = sphi %s1053_s18, %s1378_s18   ;;  %s1008_s17 = sphi %s1051_s17, %s1377_s17   ;;  %s1004_s16 = sphi %s1049_s16, %s1376_s16   ;;  %s1000_s15 = sphi %s1047_s15, %s1375_s15  }
   0x9   : > { %p45_p0 = scmp.ne.s32.totalorder %s1004_s16, %s1000_s15  ;;  %p1357_p1 = scmp.eq.s32.totalorder %s1068_s19, 0 }
   0xa   : > { %p117_p3 = scmp.eq.s32.totalorder %s652_s20, 1  ;;  %p653_p5 = scmp.ge.s32.totalorder %s1012_s18, 1 }
   0xb   : > { %p1077_p4 = por %p1357_p1, %p45_p0  ;;  %p150_p7 = scmp.lt.s32.totalorder %s1012_s18, 3 }
   0xc   : > { %p1082_p6 = por %p117_p3, %p45_p0  ;;  %s1014_s24 = smov [#allocation5]  }
   0xd   : > { %s1361_s21 = scalar_select %p1077_p4, 1, 0 }
   0xe   : > { %s1362_s22 = scalar_select %p1082_p6, 1, 0 }
   0xf   : > { %p1087_p8 = pnand %p653_p5, %p150_p7  ;;  %s162_s25 = sshll.u32 %s1014_s24, 4  ;;  %s163_s25 = int_to_ptr.vmem [resolvable:$true] %s162_s25 }
  0x10   : > { %s1101_s27 = sadd.s32 1, %s1012_s18   ;;  %s32_s28 = sadd.s32 1, %s1008_s17 }
  0x11   : > { %s1363_s23 = scalar_select %p1087_p8, 1, 0 }
  0x12   : > { %p804_p9 = pneg %p1087_p8  ;;  %s29_s29 = ssub.s32 %s1012_s18, %s1101_s27 }
  0x13   : > { %s871_s30 = scalar_lea.vmem %s163_s25, 2048  ;;  %p879_p5 = scmp.lt.s32.totalorder %s163_s25, %s163_s25 }
  0x14   : > { %p1096_p11 = pnand %p804_p9, %p1357_p1  ;;  %p872_p13 = scmp.ne.s32.totalorder %s163_s25, %s871_s30 }
  0x15   : > { %p880_p7 = scmp.lt.s32.totalorder %s871_s30, %s871_s30 }
  0x16   : > { %p862_p12 = pneg %p1096_p11 }
  0x17   : > { %p881_p10 = por %p880_p7, %p879_p5 }
  0x18   : > { %p874_p0 = pnand %p872_p13, %p862_p12 }
  0x1a   : > { %p875_p3 = pneg %p874_p0 }
  0x1c   : > { %p882_p2 = pnand %p881_p10, %p875_p3 }
  0x1e   : > { %885 = shalt.err (!%p882_p2)
}
  0x1f   : > { %s1015_s5 = smov 128   ;;  %s1016_s6 = smov 8  }
  0x20   : > { %807 = dma.hbm_to_vmem [thread:$0]  (!%p1096_p11), %s1353_s1, 2048, %s163_s25, [#allocation6], %s1015_s5, %s1015_s5, %s1016_s6  }
  0x21   : > { %p30_p2 = scmp.eq.s32.totalorder %s29_s29, 0  ;;  %p39_p9 = scmp.ne.s32.totalorder %s1008_s17, %s1004_s16 }
  0x22   : > { %p40_p10 = scmp.eq.s32.totalorder %s1012_s18, 0  ;;  %p820_p12 = scmp.lt.s32.totalorder %s1012_s18, 2 }
  0x23   : > { %s1121_s9 = scalar_select %p30_p2, %s1008_s17, %s32_s28  }
  0x24   : > { %p41_p13 = por %p40_p10, %p39_p9  ;;  %p1365_p0 = scmp.eq.s32.totalorder %s1068_s19, 1 }
  0x25   : > { %s179_s11 = sand.u32 1, %s1008_s17   ;;  %s672_s12 = sshll.u32 %s1012_s18, 11 }
  0x26   : > { %p1125_p3 = por %p1365_p0, %p39_p9  ;;  %s656_s13 = sshll.u32 %s179_s11, 7 }
  0x27   : > { %s1134_s24 = scalar_lea.hbm %s1352_s0, %s672_s12  ;;  %s183_s25 = scalar_lea.vmem [#allocation2], %s656_s13 }
  0x28   : > { %s1366_s10 = scalar_select %p1125_p3, 1, 0 }
  0x29   : > { %s190_s26 = sshll.u32 %s183_s25, 4  ;;  %p1136_p11 = pnand %p820_p12, %p41_p13  ;;  %s1140_s26 = int_to_ptr.vmem [resolvable:$true] %s190_s26 }
  0x2a   : > { %s1142_s29 = scalar_lea.sflag [#allocation3], %s179_s11  ;;  %s886_s30 = scalar_lea.hbm %s1134_s24, 2048 }
  0x2b   : > { %p887_p5 = scmp.ne.s32.totalorder %s1134_s24, %s886_s30  ;;  %p888_p7 = pneg %p1136_p11 }
  0x2c   : > { %s891_s12 = scalar_lea.hbm %s1352_s0, 4096  ;;  %p892_p10 = scmp.lt.s32.totalorder %s1134_s24, %s1352_s0 }
  0x2d   : > { %p889_p2 = pnand %p888_p7, %p887_p5  ;;  %p893_p12 = scmp.lt.s32.totalorder %s891_s12, %s886_s30 }
  0x2f   : > { %p890_p9 = pneg %p889_p2  ;;  %p894_p13 = por %p893_p12, %p892_p10 }
  0x31   : > { %p895_p0 = pnand %p894_p13, %p890_p9 }
  0x33   : > { %898 = shalt.err (!%p895_p0)
}
  0x34   : > { %s899_s11 = scalar_lea.vmem %s1140_s26, 2048  ;;  %s1017_s20 = smov [#allocation2]  }
  0x35   : > { %p900_p1 = scmp.ne.s32.totalorder %s1140_s26, %s899_s11  ;;  %s904_s25 = sshll.u32 %s1017_s20, 4  ;;  %s905_s25 = int_to_ptr.vmem [resolvable:$false] %s904_s25 }
  0x36   : > { %s906_s7 = scalar_lea.vmem %s905_s25, 4096  ;;  %p907_p2 = scmp.lt.s32.totalorder %s1140_s26, %s905_s25 }
  0x37   : > { %p902_p6 = pnand %p900_p1, %p888_p7  ;;  %p908_p3 = scmp.lt.s32.totalorder %s906_s7, %s899_s11 }
  0x39   : > { %p903_p5 = pneg %p902_p6  ;;  %p909_p4 = por %p908_p3, %p907_p2 }
  0x3b   : > { %p910_p8 = pnand %p909_p4, %p903_p5 }
  0x3d   : > { %913 = shalt.err (!%p910_p8)
}
  0x3e   : > { %811 = dma.hbm_to_vmem [thread:$0]  (!%p1136_p11), %s1134_s24, 2048, %s1140_s26, %s1142_s29, %s1015_s5, %s1015_s5, %s1016_s6  }
  0x3f   : > { %p1368_p1 = scmp.ne.s32.totalorder %s1363_s23, 0 }
  0x40   : > { %s1169_s30 = sand.u32 (!%p1368_p1), 1, %s1004_s16   ;;  %p1369_p4 = scmp.ne.s32.totalorder (!%p1368_p1), %s1361_s21, 0 }
  0x41   : > { %202 = sbr.rel (%p1368_p1) target bundleno = 374 (0x176), region = 32  ;;  %s660_s8 = sshll.u32 (!%p1368_p1), %s1169_s30, 7 }
  0x42   : > { %s205_s12 = scalar_lea.sflag (!%p1368_p1), [#allocation3], %s1169_s30  ;;  %s1175_s28 = scalar_lea.vmem (!%p1368_p1), [#allocation2], %s660_s8 }
  0x46   : > { %983 = dma.done.wait (%p1369_p4), %s205_s12, 2048  }
  0x47   : > { %985 = vsyncadd (%p1369_p4), %s205_s12, 4294965248  ;;  %p1370_p6 = scmp.eq.s32.totalorder %s1068_s19, 0 }
  0x49   : > { %987 = dma.done.wait (%p1370_p6), [#allocation6], 2048   ;;  %p1371_p8 = pmov %p1370_p6 }
  0x4a   : > { %v275_v0 = vld [vmem:[#allocation5 + $0x78] sm:$0xff]  ;;  %v274_v1 = vld [vmem:[#allocation5 + $0x70] sm:$0xff]  ;;  %v273_v2 = vld [vmem:[#allocation5 + $0x68] sm:$0xff]  ;;  %s1209_s5 = scalar_lea.vmem [#allocation7], %s660_s8  ;;  %s673_s6 = sshll.u32 %s1068_s19, 11 }
  0x4b   : > { %989 = vsyncadd (%p1371_p8), [#allocation6], 4294965248  ;;  %706 = vmatprep.subr.mxu0 %v275_v0  ;;  %762 = vmatprep.subr.mxu1 %v275_v0  ;;  %v272_v3 = vld [vmem:[#allocation5 + $0x60] sm:$0xff]  ;;  %v271_v4 = vld [vmem:[#allocation5 + $0x58] sm:$0xff]  ;;  %s524_s24 = sshll.u32 %s1209_s5, 4  ;;  %s1260_s13 = scalar_lea.hbm %s1355_s3, %s673_s6  ;;  %s1262_s24 = int_to_ptr.vmem [resolvable:$true] %s524_s24 }
  0x4c   : > { %707 = vmatpush3.msra.mxu0 %v275_v0  ;;  %778 = vmatpush3.msra.mxu1 %v275_v0  ;;  %v270_v5 = vld [vmem:[#allocation5 + $0x50] sm:$0xff]  ;;  %v269_v6 = vld [vmem:[#allocation5 + $0x48] sm:$0xff]  ;;  %v268_v7 = vld [vmem:[#allocation5 + $0x40] sm:$0xff]  ;;  %s506_s14 = scalar_lea.sflag [#allocation4], %s1169_s30  ;;  %s914_s11 = scalar_lea.vmem %s1262_s24, 2048 }
  0x4d   : > { %708 = vmatprep.subr.mxu0 %v274_v1  ;;  %763 = vmatprep.subr.mxu1 %v274_v1  ;;  %v267_v8 = vld [vmem:[#allocation5 + $0x38] sm:$0xff]  ;;  %v266_v9 = vld [vmem:[#allocation5 + $0x30] sm:$0xff]  ;;  %v244_v10 = vld [vmem:[%s1175_s28] sm:$0xff]  ;;  %p915_p3 = scmp.ne.s32.totalorder %s1262_s24, %s914_s11  ;;  %p1372_p11 = scmp.ne.s32.totalorder %s1366_s10, 0 }
  0x4e   : > { %709 = vmatpush3.msra.mxu0 %v274_v1  ;;  %779 = vmatpush3.msra.mxu1 %v274_v1  ;;  %v265_v11 = vld [vmem:[#allocation5 + $0x28] sm:$0xff]  ;;  %v264_v12 = vld [vmem:[#allocation5 + $0x20] sm:$0xff]  ;;  %v263_v13 = vld [vmem:[#allocation5 + $0x18] sm:$0xff]  ;;  %s1018_s20 = smov [#allocation7]  }
  0x4f   : > { %710 = vmatprep.subr.mxu0 %v273_v2  ;;  %764 = vmatprep.subr.mxu1 %v273_v2  ;;  %v262_v14 = vld [vmem:[#allocation5 + $0x10] sm:$0xff]  ;;  %v261_v15 = vld [vmem:[#allocation5 + $0x8] sm:$0xff]  ;;  %v260_v16 = vld [vmem:[#allocation5] sm:$0xff]  ;;  %p916_p7 = pnand %p915_p3, %p1372_p11  ;;  %s918_s25 = sshll.u32 %s1018_s20, 4  ;;  %s919_s25 = int_to_ptr.vmem [resolvable:$false] %s918_s25 }
  0x50   : > { %711 = vmatpush3.msra.mxu0 %v273_v2  ;;  %780 = vmatpush3.msra.mxu1 %v273_v2  ;;  %v245_v17 = vld [vmem:[%s1175_s28 + $0x8] sm:$0xff]  ;;  %v246_v18 = vld [vmem:[%s1175_s28 + $0x10] sm:$0xff]  ;;  %v252_v19 = vld [vmem:[%s1175_s28 + $0x40] sm:$0xff]  ;;  %s920_s7 = scalar_lea.vmem %s919_s25, 4096  ;;  %p921_p10 = scmp.lt.s32.totalorder %s1262_s24, %s919_s25 }
  0x51   : > { %712 = vmatprep.subr.mxu0 %v272_v3  ;;  %765 = vmatprep.subr.mxu1 %v272_v3  ;;  %v253_v20 = vld [vmem:[%s1175_s28 + $0x48] sm:$0xff]  ;;  %v254_v21 = vld [vmem:[%s1175_s28 + $0x50] sm:$0xff]  ;;  %v247_v22 = vld [vmem:[%s1175_s28 + $0x18] sm:$0xff]  ;;  %p917_p9 = pneg %p916_p7  ;;  %p922_p12 = scmp.lt.s32.totalorder %s920_s7, %s914_s11 }
  0x52   : > { %713 = vmatpush3.msra.mxu0 %v272_v3  ;;  %781 = vmatpush3.msra.mxu1 %v272_v3  ;;  %v248_v23 = vld [vmem:[%s1175_s28 + $0x20] sm:$0xff]  ;;  %v255_v24 = vld [vmem:[%s1175_s28 + $0x58] sm:$0xff]  ;;  %v249_v26 = vld [vmem:[%s1175_s28 + $0x28] sm:$0xff] }
  0x53   : > { %714 = vmatprep.subr.mxu0 %v271_v4  ;;  %766 = vmatprep.subr.mxu1 %v271_v4  ;;  %v256_v25 = vld [vmem:[%s1175_s28 + $0x60] sm:$0xff]  ;;  %v250_v27 = vld [vmem:[%s1175_s28 + $0x30] sm:$0xff]  ;;  %v257_v28 = vld [vmem:[%s1175_s28 + $0x68] sm:$0xff]  ;;  %p923_p13 = por %p922_p12, %p921_p10 }
  0x54   : > { %715 = vmatpush3.msra.mxu0 %v271_v4  ;;  %782 = vmatpush3.msra.mxu1 %v271_v4  ;;  %v258_v29 = vld [vmem:[%s1175_s28 + $0x70] sm:$0xff]  ;;  %v251_v30 = vld [vmem:[%s1175_s28 + $0x38] sm:$0xff]  ;;  %v1204_v32 = vld [vmem:[%s1354_s2] ss:$0 sm:$0xff] }
  0x55   : > { %716 = vmatprep.subr.mxu0 %v270_v5  ;;  %767 = vmatprep.subr.mxu1 %v270_v5  ;;  %v259_v31 = vld [vmem:[%s1175_s28 + $0x78] sm:$0xff]  ;;  %p924_p0 = pnand %p923_p13, %p917_p9 }
  0x56   : > { %717 = vmatpush3.msra.mxu0 %v270_v5  ;;  %783 = vmatpush3.msra.mxu1 %v270_v5 }
  0x57   : > { %718 = vmatprep.subr.mxu0 %v269_v6  ;;  %768 = vmatprep.subr.mxu1 %v269_v6 }
  0x58   : > { %719 = vmatpush3.msra.mxu0 %v269_v6  ;;  %784 = vmatpush3.msra.mxu1 %v269_v6 }
  0x59   : > { %720 = vmatprep.subr.mxu0 %v268_v7  ;;  %769 = vmatprep.subr.mxu1 %v268_v7 }
  0x5a   : > { %721 = vmatpush3.msra.mxu0 %v268_v7  ;;  %785 = vmatpush3.msra.mxu1 %v268_v7 }
  0x5b   : > { %722 = vmatprep.subr.mxu0 %v267_v8  ;;  %770 = vmatprep.subr.mxu1 %v267_v8 }
  0x5c   : > { %723 = vmatpush3.msra.mxu0 %v267_v8  ;;  %786 = vmatpush3.msra.mxu1 %v267_v8 }
  0x5d   : > { %724 = vmatprep.subr.mxu0 %v266_v9  ;;  %738 = vmatprep.mubr.f32.mxu0 %v244_v10 }
  0x5e   : > { %725 = vmatpush3.msra.mxu0 %v266_v9  ;;  %771 = vmatprep.subr.mxu1 %v266_v9 }
  0x5f   : > { %726 = vmatprep.subr.mxu0 %v265_v11  ;;  %787 = vmatpush3.msra.mxu1 %v266_v9 }
  0x60   : > { %727 = vmatpush3.msra.mxu0 %v265_v11  ;;  %772 = vmatprep.subr.mxu1 %v265_v11 }
  0x61   : > { %728 = vmatprep.subr.mxu0 %v264_v12  ;;  %788 = vmatpush3.msra.mxu1 %v265_v11 }
  0x62   : > { %729 = vmatpush3.msra.mxu0 %v264_v12  ;;  %773 = vmatprep.subr.mxu1 %v264_v12 }
  0x63   : > { %730 = vmatprep.subr.mxu0 %v263_v13  ;;  %789 = vmatpush3.msra.mxu1 %v264_v12 }
  0x64   : > { %731 = vmatpush3.msra.mxu0 %v263_v13  ;;  %774 = vmatprep.subr.mxu1 %v263_v13 }
  0x65   : > { %732 = vmatprep.subr.mxu0 %v262_v14  ;;  %790 = vmatpush3.msra.mxu1 %v263_v13 }
  0x66   : > { %733 = vmatpush3.msra.mxu0 %v262_v14  ;;  %775 = vmatprep.subr.mxu1 %v262_v14 }
  0x67   : > { %734 = vmatprep.subr.mxu0 %v261_v15  ;;  %791 = vmatpush3.msra.mxu1 %v262_v14 }
  0x68   : > { %735 = vmatpush3.msra.mxu0 %v261_v15  ;;  %776 = vmatprep.subr.mxu1 %v261_v15 }
  0x69   : > { %736 = vmatprep.subr.mxu0 %v260_v16  ;;  %792 = vmatpush3.msra.mxu1 %v261_v15 }
  0x6a   : > { %737 = vmatpush3.msra.mxu0 %v260_v16  ;;  %777 = vmatprep.subr.mxu1 %v260_v16 }
  0x6b   : > { %739 = vmatmul.mubr.f32.vlgmr.msra.gmra.mxu0 %v245_v17  ;;  %793 = vmatpush3.msra.mxu1 %v260_v16 }
  0x6c   : > { %741 = vmatprep.mubr.f32.mxu0 %v246_v18  ;;  %750 = vmatprep.mubr.f32.mxu1 %v252_v19 }
  0x6d   : > { %751 = vmatmul.mubr.f32.vlgmr.msra.gmra.mxu1 %v253_v20 }
  0x6e   : > { %753 = vmatprep.mubr.f32.mxu1 %v254_v21 }
  0x6f   : > { %742 = vmatmul.mubr.f32.gmra.mxu0 %v247_v22 }
  0x70   : > { %744 = vmatprep.mubr.f32.mxu0 %v248_v23 }
  0x71   : > { %754 = vmatmul.mubr.f32.gmra.mxu1 %v255_v24 }
  0x72   : > { %756 = vmatprep.mubr.f32.mxu1 %v256_v25 }
  0x73   : > { %745 = vmatmul.mubr.f32.gmra.mxu0 %v249_v26 }
  0x74   : > { %747 = vmatprep.mubr.f32.mxu0 %v250_v27 }
  0x75   : > { %757 = vmatmul.mubr.f32.gmra.mxu1 %v257_v28 }
  0x76   : > { %759 = vmatprep.mubr.f32.mxu1 %v258_v29 }
  0x77   : > { %748 = vmatmul.mubr.f32.gmra.mxu0 %v251_v30 }
  0x79   : > { %760 = vmatmul.mubr.f32.gmra.mxu1 %v259_v31 }
 0x12b   : > { %v740_v33 = vpop.f32.mrf.mxu0 }
 0x12c   : > { %v355_v34 = vadd.f32 %v740_v33, %v1204_v32 }
 0x12d   : > { %v349_v35 = vpop.f32.mrf.mxu0  ;;  %v752_v36 = vpop.f32.mrf.mxu1 }
 0x12e   : > { %429 = vst [vmem:[%s1209_s5 + $0x8] sm:$0xff] %v355_v34  ;;  %v350_v37 = vadd.f32 %v1204_v32, %v349_v35  ;;  %v1214_v38 = vadd.f32 %v752_v36, %v1204_v32  ;;  %v466_v46 = vmul.f32 %v355_v34, %v355_v34 }
 0x12f   : > { %v743_v39 = vpop.f32.mrf.mxu0  ;;  %v389_v40 = vpop.f32.mrf.mxu1 }
 0x130   : > { %428 = vst [vmem:[%s1209_s5] sm:$0xff] %v350_v37  ;;  %v465_v41 = vmul.f32 %v350_v37, %v350_v37  ;;  %v365_v42 = vadd.f32 %v743_v39, %v1204_v32  ;;  %437 = vst [vmem:[%s1209_s5 + $0x48] sm:$0xff] %v1214_v38  ;;  %v1221_v44 = vadd.f32 %v1204_v32, %v389_v40 }
 0x131   : > { %v359_v43 = vpop.f32.mrf.mxu0  ;;  %v755_v45 = vpop.f32.mrf.mxu1  ;;  %v444_v47 = vadd.f32 %v355_v34, %v350_v37 }
 0x132   : > { %431 = vst [vmem:[%s1209_s5 + $0x18] sm:$0xff] %v365_v42  ;;  %v360_v48 = vadd.f32 %v1204_v32, %v359_v43  ;;  %v1226_v49 = vadd.f32 %v755_v45, %v1204_v32  ;;  %436 = vst [vmem:[%s1209_s5 + $0x40] sm:$0xff] %v1221_v44  ;;  %v481_v52 = vadd.f32 %v466_v46, %v465_v41 }
 0x133   : > { %v746_v50 = vpop.f32.mrf.mxu0  ;;  %v399_v51 = vpop.f32.mrf.mxu1  ;;  %v468_v59 = vmul.f32 %v365_v42, %v365_v42 }
 0x134   : > { %430 = vst [vmem:[%s1209_s5 + $0x10] sm:$0xff] %v360_v48  ;;  %v445_v53 = vadd.f32 %v444_v47, %v360_v48  ;;  %v467_v54 = vmul.f32 %v360_v48, %v360_v48  ;;  %v375_v55 = vadd.f32 %v746_v50, %v1204_v32  ;;  %439 = vst [vmem:[%s1209_s5 + $0x58] sm:$0xff] %v1226_v49 }
 0x135   : > { %v369_v56 = vpop.f32.mrf.mxu0  ;;  %v1235_v57 = vadd.f32 %v1204_v32, %v399_v51  ;;  %v758_v58 = vpop.f32.mrf.mxu1 }
 0x136   : > { %v482_v60 = vadd.f32 %v481_v52, %v467_v54  ;;  %433 = vst [vmem:[%s1209_s5 + $0x28] sm:$0xff] %v375_v55  ;;  %v370_v61 = vadd.f32 %v1204_v32, %v369_v56  ;;  %v446_v62 = vadd.f32 %v445_v53, %v365_v42  ;;  %v1242_v0 = vadd.f32 %v758_v58, %v1204_v32 }
 0x137   : > { %v749_v63 = vpop.f32.mrf.mxu0  ;;  %438 = vst [vmem:[%s1209_s5 + $0x50] sm:$0xff] %v1235_v57  ;;  %v409_v1 = vpop.f32.mrf.mxu1  ;;  %v470_v9 = vmul.f32 %v375_v55, %v375_v55 }
 0x138   : > { %432 = vst [vmem:[%s1209_s5 + $0x20] sm:$0xff] %v370_v61  ;;  %v447_v2 = vadd.f32 %v446_v62, %v370_v61  ;;  %v469_v3 = vmul.f32 %v370_v61, %v370_v61  ;;  %v483_v4 = vadd.f32 %v482_v60, %v468_v59  ;;  %v385_v5 = vadd.f32 %v749_v63, %v1204_v32 }
 0x139   : > { %v379_v6 = vpop.f32.mrf.mxu0  ;;  %441 = vst [vmem:[%s1209_s5 + $0x68] sm:$0xff] %v1242_v0  ;;  %v410_v7 = vadd.f32 %v1204_v32, %v409_v1  ;;  %v761_v8 = vpop.f32.mrf.mxu1 }
 0x13a   : > { %v484_v10 = vadd.f32 %v483_v4, %v469_v3  ;;  %435 = vst [vmem:[%s1209_s5 + $0x38] sm:$0xff] %v385_v5  ;;  %v380_v11 = vadd.f32 %v1204_v32, %v379_v6  ;;  %v448_v12 = vadd.f32 %v447_v2, %v375_v55  ;;  %v1255_v13 = vadd.f32 %v761_v8, %v1204_v32 }
 0x13b   : > { %440 = vst [vmem:[%s1209_s5 + $0x60] sm:$0xff] %v410_v7  ;;  %v419_v14 = vpop.f32.mrf.mxu1  ;;  %v472_v19 = vmul.f32 %v385_v5, %v385_v5 }
 0x13c   : > { %434 = vst [vmem:[%s1209_s5 + $0x30] sm:$0xff] %v380_v11  ;;  %v449_v15 = vadd.f32 %v448_v12, %v380_v11  ;;  %v471_v16 = vmul.f32 %v380_v11, %v380_v11  ;;  %v485_v17 = vadd.f32 %v484_v10, %v470_v9  ;;  %v420_v18 = vadd.f32 %v1204_v32, %v419_v14 }
 0x13d   : > { %443 = vst [vmem:[%s1209_s5 + $0x78] sm:$0xff] %v1255_v13 }
 0x13e   : > { %v486_v20 = vadd.f32 %v485_v17, %v471_v16  ;;  %v450_v21 = vadd.f32 %v449_v15, %v385_v5  ;;  %442 = vst [vmem:[%s1209_s5 + $0x70] sm:$0xff] %v420_v18 }
 0x13f   : > { %927 = shalt.err (!%p924_p0)
}
 0x140   : > { %s928_s8 = scalar_lea.hbm %s1260_s13, 2048  ;;  %s932_s21 = scalar_lea.hbm %s1355_s3, 4096 }
 0x141   : > { %p929_p5 = scmp.ne.s32.totalorder %s1260_s13, %s928_s8  ;;  %p933_p4 = scmp.lt.s32.totalorder %s1260_s13, %s1355_s3 }
 0x142   : > { %p934_p6 = scmp.lt.s32.totalorder %s932_s21, %s928_s8 }
 0x143   : > { %p930_p2 = pnand %p929_p5, %p1372_p11 }
 0x144   : > { %p935_p8 = por %p934_p6, %p933_p4 }
 0x145   : > { %p931_p1 = pneg %p930_p2 }
 0x147   : > { %p936_p3 = pnand %p935_p8, %p931_p1 }
 0x149   : > { %939 = shalt.err (!%p936_p3)
}
 0x14a   : > { %s1019_s6 = smov 128   ;;  %s1020_s26 = smov 8   ;;  %v451_v22 = vadd.f32 %v450_v21, %v1221_v44  ;;  %v473_v23 = vmul.f32 %v1221_v44, %v1221_v44  ;;  %v487_v24 = vadd.f32 %v486_v20, %v472_v19  ;;  %v474_v25 = vmul.f32 %v1214_v38, %v1214_v38 }
 0x14b   : > { %800 = dma.vmem_to_hbm [thread:$0]  (%p1372_p11), %s1262_s24, 2048, %s1260_s13, %s506_s14, %s1019_s6, %s1019_s6, %s1020_s26   ;;  %v475_v29 = vmul.f32 %v1235_v57, %v1235_v57  ;;  %v476_v31 = vmul.f32 %v1226_v49, %v1226_v49  ;;  %v477_v35 = vmul.f32 %v410_v7, %v410_v7  ;;  %v478_v37 = vmul.f32 %v1242_v0, %v1242_v0 }
 0x14c   : > { %v488_v26 = vadd.f32 %v487_v24, %v473_v23  ;;  %v452_v27 = vadd.f32 %v451_v22, %v1214_v38  ;;  %v479_v41 = vmul.f32 %v420_v18, %v420_v18  ;;  %v480_v43 = vmul.f32 %v1255_v13, %v1255_v13  ;;  %s663_s24 = sshll.u32 %s1169_s30, 1  ;;  %s669_s29 = sshll.u32 %s1068_s19, 5 }
 0x14d   : > { %s241_s13 = scalar_lea.vmem [#allocation8], %s663_s24  ;;  %vm502_vm0 = vcmask 1040384   ;;  %s1315_s25 = scalar_lea.hbm %s1356_s4, %s669_s29 }
 0x14e   : > { %v453_v28 = vadd.f32 %v452_v27, %v1235_v57  ;;  %v489_v30 = vadd.f32 %v488_v26, %v474_v25  ;;  %s540_s14 = sshll.u32 %s241_s13, 4  ;;  %s511_s7 = scalar_lea.sflag [#allocation9], %s1169_s30  ;;  %s541_s14 = int_to_ptr.vmem [resolvable:$true] %s540_s14 }
 0x14f   : > { %s940_s8 = scalar_lea.vmem %s541_s14, 32  ;;  %s1021_s19 = smov [#allocation8]  }
 0x150   : > { %v490_v32 = vadd.f32 %v489_v30, %v475_v29  ;;  %v454_v33 = vadd.f32 %v453_v28, %v1226_v49  ;;  %p941_p7 = scmp.ne.s32.totalorder %s541_s14, %s940_s8  ;;  %s944_s12 = sshll.u32 %s1021_s19, 4  ;;  %s945_s12 = int_to_ptr.vmem [resolvable:$false] %s944_s12 }
 0x151   : > { %s946_s28 = scalar_lea.vmem %s945_s12, 64  ;;  %p947_p12 = scmp.lt.s32.totalorder %s541_s14, %s945_s12 }
 0x152   : > { %v455_v34 = vadd.f32 %v454_v33, %v410_v7  ;;  %v491_v36 = vadd.f32 %v490_v32, %v476_v31  ;;  %p942_p9 = pnand %p941_p7, %p1372_p11  ;;  %p948_p13 = scmp.lt.s32.totalorder %s946_s28, %s940_s8 }
 0x154   : > { %v492_v38 = vadd.f32 %v491_v36, %v477_v35  ;;  %v456_v39 = vadd.f32 %v455_v34, %v1242_v0  ;;  %p943_p10 = pneg %p942_p9  ;;  %p949_p0 = por %p948_p13, %p947_p12 }
 0x156   : > { %v457_v40 = vadd.f32 %v456_v39, %v420_v18  ;;  %v493_v42 = vadd.f32 %v492_v38, %v478_v37  ;;  %p950_p5 = pnand %p949_p0, %p943_p10 }
 0x158   : > { %v458_v44 = vadd.f32 %v457_v40, %v1255_v13  ;;  %v494_v45 = vadd.f32 %v493_v42, %v479_v41 }
 0x15a   : > { %v459_v46 = vrot.slane %v458_v44, 4  ;;  %v495_v47 = vadd.f32 %v494_v45, %v480_v43 }
 0x15c   : > { %v460_v48 = vadd.f32 %v459_v46, %v458_v44  ;;  %v496_v49 = vrot.slane %v495_v47, 4 }
 0x15e   : > { %v461_v50 = vrot.slane %v460_v48, 2  ;;  %v497_v51 = vadd.f32 %v496_v49, %v495_v47 }
 0x160   : > { %v462_v52 = vadd.f32 %v461_v50, %v460_v48  ;;  %v498_v53 = vrot.slane %v497_v51, 2 }
 0x162   : > { %v463_v54 = vrot.slane %v462_v52, 1  ;;  %v499_v55 = vadd.f32 %v498_v53, %v497_v51 }
 0x164   : > { %v500_v56 = vrot.slane %v499_v55, 1  ;;  %v464_v57 = vadd.f32 %v463_v54, %v462_v52 }
 0x166   : > { %v501_v58 = vadd.f32 %v500_v56, %v499_v55 }
 0x168   : > { %v503_v59 = vsel %vm502_vm0, %v464_v57, %v501_v58 }
 0x169   : > { %504 = vst [vmem:[%s241_s13] sm:$0x3] %v503_v59 }
 0x16a   : > { %953 = shalt.err (!%p950_p5)
}
 0x16b   : > { %s954_s21 = scalar_lea.hbm %s1315_s25, 32  ;;  %s958_s5 = scalar_lea.hbm %s1356_s4, 64 }
 0x16c   : > { %p955_p2 = scmp.ne.s32.totalorder %s1315_s25, %s954_s21  ;;  %p959_p6 = scmp.lt.s32.totalorder %s1315_s25, %s1356_s4 }
 0x16d   : > { %p960_p8 = scmp.lt.s32.totalorder %s958_s5, %s954_s21 }
 0x16e   : > { %p956_p1 = pnand %p955_p2, %p1372_p11 }
 0x16f   : > { %p961_p3 = por %p960_p8, %p959_p6 }
 0x170   : > { %p957_p4 = pneg %p956_p1 }
 0x172   : > { %p962_p7 = pnand %p961_p3, %p957_p4 }
 0x174   : > { %965 = shalt.err (!%p962_p7)
}
 0x175   : > { %801 = dma.vmem_to_hbm [thread:$0]  (%p1372_p11), %s541_s14, 32, %s1315_s25, %s511_s7  }
 0x176 PF: > { %s552_s24 = sand.u32 1, %s1000_s15   ;;  %p1373_p9 = scmp.ne.s32.totalorder %s1362_s22, 0 }
 0x177   : > { %p1374_p10 = scmp.ge.s32.totalorder %s1012_s18, 2  ;;  %s553_s29 = scalar_lea.sflag [#allocation4], %s552_s24 }
 0x179   : > { %p813_p12 = pnand %p1374_p10, %p1373_p9 }
 0x17b   : > { %p814_p13 = pneg %p813_p12 }
 0x17d   : > { %991 = dma.done.wait (%p814_p13), %s553_s29, 2048  }
 0x17e   : > { %993 = vsyncadd (%p814_p13), %s553_s29, 4294965248  ;;  %s562_s13 = scalar_lea.sflag [#allocation9], %s552_s24 }
 0x17f   : > { %995 = dma.done.wait (%p814_p13), %s562_s13, 32  }
 0x180   : > { %997 = vsyncadd (%p814_p13), %s562_s13, 4294967264  ;;  %p22_p11 = scmp.ge.s32.totalorder %s1101_s27, 4   ;;  %s1375_s15 = smov %s1004_s16 }
 0x181   : > { %s1376_s16 = smov %s1008_s17  ;;  %s1377_s17 = smov %s1121_s9 }
 0x182   : > { %s1378_s18 = smov %s1101_s27  ;;  %24 = sbr.rel (!%p22_p11) target bundleno = 8 (0x8), region = 98 }
 0x187   :  { %567 = vsyncpa [#allocation3], 1 }
 0x188   :  { %569 = vsyncpa [#allocation3 + $0x1], 1 }
 0x189   :  { %570 = vsyncpa [#allocation6], 1 }
 0x18a   :  { %571 = vsyncpa [#allocation4], 1 }
 0x18b   :  { %573 = vsyncpa [#allocation4 + $0x1], 1 }
 0x18c   :  { %574 = vsyncpa [#allocation9], 1 }
 0x18d   :  { %576 = vsyncpa [#allocation9 + $0x1], 1 }

</bundles_post_ra>
